<compile_context>
chip_gen: v5e
topology: v5e:2x2
jax: 0.10.0
libtpu: 0.0.40
codegen_flags: <defaults>
</compile_context>

<pallas_src>
import jax
import jax.numpy as jnp
from jax.experimental import pallas as pl
from jax.experimental.pallas import tpu as pltpu


_LANE = 128
_SUBLANE_PACK = {4: 8, 2: 16, 1: 32}  # itemsize -> sublane pack factor


def _make_attention_concat_kernel(num_inputs):
    """Scale each (1, tile_r, Q) input block by its SMEM scalar weight and write
    it into its branch slab of the (1, L, tile_r, Q) output block."""
    L = num_inputs

    def kernel(w_ref, *refs):
        x_refs = refs[:L]          # L VMEM input blocks, each (1, tile_r, Q)
        o_ref = refs[L]            # VMEM output block, (1, L, tile_r, Q)
        for i in range(L):
            wi = w_ref[i].astype(o_ref.dtype)       # scalar cast, native-dtype mul
            o_ref[0, i] = x_refs[i][0] * wi

    return kernel


def _vmem_plan():
    """Generation-aware (budget_for_working_set, vmem_limit_bytes)."""
    try:
        cap = int(pltpu.get_tpu_info().vmem_capacity_bytes)
    except Exception:
        cap = 64 << 20                      # conservative: safe on every generation
    limit = min((cap * 3) // 4, 96 << 20)   # 96 MiB on 128 MiB parts, 48 MiB on v7x
    budget = (limit * 2) // 3               # double-buffered working-set budget
    return budget, limit


def _factor_rq(m, itemsize, max_q=2048):
    """Factor the contiguous per-(batch, branch) chunk of m elements into (R, Q)
    with Q a multiple of 128 (lane-dense) and, if possible, R a multiple of the
    sublane pack factor (fully dense (8,128)-style tiles)."""
    sub = _SUBLANE_PACK.get(itemsize, 8)
    if m % _LANE != 0:
        return 1, m, sub                    # irregular extent: single-row fallback
    cands = [q for q in range(_LANE, min(m, max_q) + 1, _LANE) if m % q == 0]
    dense = [q for q in cands if (m // q) % sub == 0]
    q = (dense or cands)[-1]
    return m // q, q, sub


def _pick_tile_r(r, q, num_inputs, itemsize, budget, sub):
    """Largest R-tile whose double-buffered working set (L inputs + the L-slab
    output, x2 buffers) fits the budget; multiple of the sublane pack factor."""
    per_row = 4 * num_inputs * q * itemsize
    cap = max(sub, budget // per_row)
    if r <= cap:
        return r
    return max(sub, (cap // sub) * sub)


def attention_concat(x_list, attention_weights):
    """x_list: list of L arrays, each (N, C, H, W); attention_weights: (L,).
    Returns (N, L*C, H, W), matching AttentionConcat.forward (output keeps the
    input dtype)."""
    L = len(x_list)
    N, C, H, W = x_list[0].shape
    dtype = x_list[0].dtype
    for x in x_list:
        assert x.shape == (N, C, H, W) and x.dtype == dtype
    assert attention_weights.shape == (L,)

    itemsize = jnp.dtype(dtype).itemsize
    M = C * H * W

    # Softmax over the L branch weights: L scalars -> plain-JAX glue, once.
    w = jax.nn.softmax(attention_weights.astype(jnp.float32))

    # Free re-views onto a dense (R, Q) layout (per-(n, branch) chunk is contiguous).
    R, Q, sub = _factor_rq(M, itemsize)
    xs = [x.reshape(N, R, Q) for x in x_list]

    budget, vmem_limit = _vmem_plan()
    tile_r = _pick_tile_r(R, Q, L, itemsize, budget, sub)
    n_r = pl.cdiv(R, tile_r)

    # Give megacore parts (v7x: 2 TCs) at least 2 parallel steps when splittable.
    if N * n_r < 2 and R >= 2 * sub:
        half = -(-R // 2)
        tile_r = -(-half // sub) * sub
        n_r = pl.cdiv(R, tile_r)

    grid = (N, n_r)

    in_specs = [pl.BlockSpec(memory_space=pltpu.MemorySpace.SMEM)]     # softmax weights
    in_specs += [
        pl.BlockSpec((1, tile_r, Q), lambda n, j: (n, j, 0)) for _ in range(L)
    ]
    out_spec = pl.BlockSpec((1, L, tile_r, Q), lambda n, j: (n, 0, j, 0))

    out = pl.pallas_call(
        _make_attention_concat_kernel(L),
        out_shape=jax.ShapeDtypeStruct((N, L, R, Q), dtype),
        grid=grid,
        in_specs=in_specs,
        out_specs=out_spec,
        compiler_params=pltpu.CompilerParams(
            dimension_semantics=("parallel", "parallel"),
            vmem_limit_bytes=vmem_limit),
    )(w, *xs)

    # Free reshape: (N, L, R, Q) -> (N, L*C, H, W) (chunks are contiguous & ordered).
    return out.reshape(N, L * C, H, W)


def _reference(x_list, attention_weights):
    w = jax.nn.softmax(attention_weights.astype(jnp.float32))
    return jnp.concatenate([x_list[i] * w[i] for i in range(len(x_list))], axis=1)


if __name__ == "__main__":
    key = jax.random.PRNGKey(0)
    keys = jax.random.split(key, 5)

    # AttentionConcat(in_channels=4): 4 branch tensors, each (N=2, C=4, H=16, W=16).
    L = 4
    N, C, H, W = 2, 4, 16, 16
    x_list = [
        jax.random.normal(keys[i], (N, C, H, W), dtype=jnp.float32)
        for i in range(L)
    ]
    attention_weights = jax.random.normal(keys[4], (L,), dtype=jnp.float32)

    fn = jax.jit(attention_concat)
    out = jax.block_until_ready(fn(x_list, attention_weights))

    ref = _reference(x_list, attention_weights)
    assert out.shape == (N, L * C, H, W), out.shape
    assert jnp.allclose(out, ref, atol=1e-6, rtol=1e-6), "mismatch vs reference"

    print("KERNEL_OK")
</pallas_src>

<mosaic_0001>
module attributes {stable_mosaic.version = 11 : i64} {
  func.func @kernel(%arg0: i32, %arg1: i32, %arg2: memref<4xf32, #tpu.memory_space<smem>>, %arg3: memref<1x8x128xf32, #tpu.memory_space<vmem>>, %arg4: memref<1x8x128xf32, #tpu.memory_space<vmem>>, %arg5: memref<1x8x128xf32, #tpu.memory_space<vmem>>, %arg6: memref<1x8x128xf32, #tpu.memory_space<vmem>>, %arg7: memref<1x4x8x128xf32, #tpu.memory_space<vmem>>) attributes {dimension_semantics = [#tpu.dimension_semantics<parallel>, #tpu.dimension_semantics<parallel>], iteration_bounds = array<i64: 2, 1>, scalar_prefetch = 0 : i64, scratch_operands = 0 : i64, tpu.core_type = #tpu.core_type<tc>, window_params = [{transform_indices = @transform_0, window_bounds = array<i64: 4>}, {transform_indices = @transform_1, window_bounds = array<i64: 1, 8, 128>}, {transform_indices = @transform_2, window_bounds = array<i64: 1, 8, 128>}, {transform_indices = @transform_3, window_bounds = array<i64: 1, 8, 128>}, {transform_indices = @transform_4, window_bounds = array<i64: 1, 8, 128>}, {transform_indices = @transform_5, window_bounds = array<i64: 1, 4, 8, 128>}]} {
    %c0 = arith.constant 0 : index
    %0 = memref.load %arg2[%c0] : memref<4xf32, #tpu.memory_space<smem>>
    %c0_0 = arith.constant 0 : index
    %c0_1 = arith.constant 0 : index
    %c0_2 = arith.constant 0 : index
    %1 = vector.load %arg3[%c0_0, %c0_1, %c0_2] : memref<1x8x128xf32, #tpu.memory_space<vmem>>, vector<1x8x128xf32>
    %2 = vector.shape_cast %1 : vector<1x8x128xf32> to vector<8x128xf32>
    %3 = vector.broadcast %0 : f32 to vector<8x128xf32>
    %4 = arith.mulf %2, %3 : vector<8x128xf32>
    %c0_3 = arith.constant 0 : index
    %c0_4 = arith.constant 0 : index
    %c0_5 = arith.constant 0 : index
    %c0_6 = arith.constant 0 : index
    %5 = vector.load %arg7[%c0_3, %c0_4, %c0_5, %c0_6] : memref<1x4x8x128xf32, #tpu.memory_space<vmem>>, vector<1x1x8x128xf32>
    %6 = vector.shape_cast %5 : vector<1x1x8x128xf32> to vector<8x128xf32>
    %7 = vector.shape_cast %4 : vector<8x128xf32> to vector<1x1x8x128xf32>
    tpu.vector_store %arg7[%c0_3, %c0_4, %c0_5, %c0_6], %7 {strides = array<i32>} : memref<1x4x8x128xf32, #tpu.memory_space<vmem>>, vector<1x1x8x128xf32>,
    %c1 = arith.constant 1 : index
    %8 = memref.load %arg2[%c1] : memref<4xf32, #tpu.memory_space<smem>>
    %c0_7 = arith.constant 0 : index
    %c0_8 = arith.constant 0 : index
    %c0_9 = arith.constant 0 : index
    %9 = vector.load %arg4[%c0_7, %c0_8, %c0_9] : memref<1x8x128xf32, #tpu.memory_space<vmem>>, vector<1x8x128xf32>
    %10 = vector.shape_cast %9 : vector<1x8x128xf32> to vector<8x128xf32>
    %11 = vector.broadcast %8 : f32 to vector<8x128xf32>
    %12 = arith.mulf %10, %11 : vector<8x128xf32>
    %c0_10 = arith.constant 0 : index
    %c1_11 = arith.constant 1 : index
    %c0_12 = arith.constant 0 : index
    %c0_13 = arith.constant 0 : index
    %13 = vector.load %arg7[%c0_10, %c1_11, %c0_12, %c0_13] : memref<1x4x8x128xf32, #tpu.memory_space<vmem>>, vector<1x1x8x128xf32>
    %14 = vector.shape_cast %13 : vector<1x1x8x128xf32> to vector<8x128xf32>
    %15 = vector.shape_cast %12 : vector<8x128xf32> to vector<1x1x8x128xf32>
    tpu.vector_store %arg7[%c0_10, %c1_11, %c0_12, %c0_13], %15 {strides = array<i32>} : memref<1x4x8x128xf32, #tpu.memory_space<vmem>>, vector<1x1x8x128xf32>,
    %c2 = arith.constant 2 : index
    %16 = memref.load %arg2[%c2] : memref<4xf32, #tpu.memory_space<smem>>
    %c0_14 = arith.constant 0 : index
    %c0_15 = arith.constant 0 : index
    %c0_16 = arith.constant 0 : index
    %17 = vector.load %arg5[%c0_14, %c0_15, %c0_16] : memref<1x8x128xf32, #tpu.memory_space<vmem>>, vector<1x8x128xf32>
    %18 = vector.shape_cast %17 : vector<1x8x128xf32> to vector<8x128xf32>
    %19 = vector.broadcast %16 : f32 to vector<8x128xf32>
    %20 = arith.mulf %18, %19 : vector<8x128xf32>
    %c0_17 = arith.constant 0 : index
    %c2_18 = arith.constant 2 : index
    %c0_19 = arith.constant 0 : index
    %c0_20 = arith.constant 0 : index
    %21 = vector.load %arg7[%c0_17, %c2_18, %c0_19, %c0_20] : memref<1x4x8x128xf32, #tpu.memory_space<vmem>>, vector<1x1x8x128xf32>
    %22 = vector.shape_cast %21 : vector<1x1x8x128xf32> to vector<8x128xf32>
    %23 = vector.shape_cast %20 : vector<8x128xf32> to vector<1x1x8x128xf32>
    tpu.vector_store %arg7[%c0_17, %c2_18, %c0_19, %c0_20], %23 {strides = array<i32>} : memref<1x4x8x128xf32, #tpu.memory_space<vmem>>, vector<1x1x8x128xf32>,
    %c3 = arith.constant 3 : index
    %24 = memref.load %arg2[%c3] : memref<4xf32, #tpu.memory_space<smem>>
    %c0_21 = arith.constant 0 : index
    %c0_22 = arith.constant 0 : index
    %c0_23 = arith.constant 0 : index
    %25 = vector.load %arg6[%c0_21, %c0_22, %c0_23] : memref<1x8x128xf32, #tpu.memory_space<vmem>>, vector<1x8x128xf32>
    %26 = vector.shape_cast %25 : vector<1x8x128xf32> to vector<8x128xf32>
    %27 = vector.broadcast %24 : f32 to vector<8x128xf32>
    %28 = arith.mulf %26, %27 : vector<8x128xf32>
    %c0_24 = arith.constant 0 : index
    %c3_25 = arith.constant 3 : index
    %c0_26 = arith.constant 0 : index
    %c0_27 = arith.constant 0 : index
    %29 = vector.load %arg7[%c0_24, %c3_25, %c0_26, %c0_27] : memref<1x4x8x128xf32, #tpu.memory_space<vmem>>, vector<1x1x8x128xf32>
    %30 = vector.shape_cast %29 : vector<1x1x8x128xf32> to vector<8x128xf32>
    %31 = vector.shape_cast %28 : vector<8x128xf32> to vector<1x1x8x128xf32>
    tpu.vector_store %arg7[%c0_24, %c3_25, %c0_26, %c0_27], %31 {strides = array<i32>} : memref<1x4x8x128xf32, #tpu.memory_space<vmem>>, vector<1x1x8x128xf32>,
    return
  }
  func.func @transform_0(%arg0: i32, %arg1: i32) -> i32 {
    %c0_i32 = arith.constant 0 : i32
    %c0_i32_0 = arith.constant 0 : i32
    return %c0_i32 : i32
  }
  func.func @transform_1(%arg0: i32, %arg1: i32) -> (i32, i32, i32) {
    %c0_i32 = arith.constant 0 : i32
    %c0_i32_0 = arith.constant 0 : i32
    return %arg0, %arg1, %c0_i32 : i32, i32, i32
  }
  func.func @transform_2(%arg0: i32, %arg1: i32) -> (i32, i32, i32) {
    %c0_i32 = arith.constant 0 : i32
    %c0_i32_0 = arith.constant 0 : i32
    return %arg0, %arg1, %c0_i32 : i32, i32, i32
  }
  func.func @transform_3(%arg0: i32, %arg1: i32) -> (i32, i32, i32) {
    %c0_i32 = arith.constant 0 : i32
    %c0_i32_0 = arith.constant 0 : i32
    return %arg0, %arg1, %c0_i32 : i32, i32, i32
  }
  func.func @transform_4(%arg0: i32, %arg1: i32) -> (i32, i32, i32) {
    %c0_i32 = arith.constant 0 : i32
    %c0_i32_0 = arith.constant 0 : i32
    return %arg0, %arg1, %c0_i32 : i32, i32, i32
  }
  func.func @transform_5(%arg0: i32, %arg1: i32) -> (i32, i32, i32, i32) {
    %c0_i32 = arith.constant 0 : i32
    %c0_i32_0 = arith.constant 0 : i32
    %c0_i32_1 = arith.constant 0 : i32
    return %arg0, %c0_i32, %arg1, %c0_i32_0 : i32, i32, i32, i32
  }
}

</mosaic_0001>

<bundles_post_ra>
// kernel: attention_concat.1
= control target key start
LH: loop header
LB: loop body
LE: loop exit
PB: predicated region body
PF: predicated region fallthrough
CT: control target
= control target key end

     0   :  { %10 = vsyncpa [#allocation3], 0  ;;  %s643_s18 = smov 0   ;;  %s645_s19 = smov 0   ;;  %s689_s0 = inlined_call_operand.vmem [shape: f32[4], index: 0, kind: input, shape index: {}]   ;;  %s690_s1 = inlined_call_operand.vmem [shape: f32[2,8,128], index: 1, kind: input, shape index: {}]   ;;  %s691_s2 = inlined_call_operand.vmem [shape: f32[2,8,128], index: 2, kind: input, shape index: {}]   ;;  %s692_s3 = inlined_call_operand.vmem [shape: f32[2,8,128], index: 3, kind: input, shape index: {}]   ;;  %s693_s4 = inlined_call_operand.vmem [shape: f32[2,8,128], index: 4, kind: input, shape index: {}]   ;;  %s694_s5 = inlined_call_operand.vmem [shape: f32[2,4,8,128], index: 5, kind: output, shape index: {}]  }
   0x1   :  { %s647_s20 = smov 0  }
   0x2 LB: > { %s512_s21 = sadd.s32 4294967295, %s610_s20   ;;  %s28_s22 = sadd.s32 1, %s606_s19  ;;  %s610_s20 = sphi %s647_s20, %s16_s20   ;;  %s606_s19 = sphi %s645_s19, %s696_s19   ;;  %s602_s18 = sphi %s643_s18, %s695_s18  }
   0x3   : > { %p30_p0 = scmp.ge.s32.totalorder %s28_s22, 2  ;;  %p514_p1 = scmp.ge.s32.totalorder %s610_s20, 1 }
   0x4   : > { %p194_p2 = scmp.lt.s32.totalorder %s610_s20, 3  ;;  %p542_p4 = scmp.eq.s32.totalorder %s512_s21, 0 }
   0x5   : > { %s698_s22 = smov (%p30_p0, %s28_s22), 0  ;;  %s206_s25 = sshll.u32 %s689_s0, 4  ;;  %s207_s25 = int_to_ptr.vmem [resolvable:$true] %s206_s25 }
   0x6   : > { %p195_p3 = pnand %p514_p1, %p194_p2  ;;  %s612_s26 = smov [#allocation2]  }
   0x8   : > { %p538_p5 = pneg %p195_p3  ;;  %259 = sbr.rel (%p195_p3) target bundleno = 32 (0x20), region = 40 }
   0xa   : > { %p539_p6 = pnand %p542_p4, %p538_p5 }
   0xc   : > { %541 = dma.vmem_to_smem (!%p539_p6), %s207_s25, 16, %s612_s26, [#allocation3]  }
   0xd   : > { %597 = dma.done.wait (%p542_p4), [#allocation3], 16  }
   0xe   : > { %599 = vsyncadd (%p542_p4), [#allocation3], 4294967280 }
   0xf   : > { %266 = sfence }
  0x10   : > { %p315_p7 = scmp.lt.s32.totalorder %s602_s18, 1  ;;  %s351_s27 = sld [smem:[#allocation2]] }
  0x11   : > { %s525_s28 = sld [smem:[#allocation2 + $0x1]] }
  0x12   : > { %s700_s18 = smov (!%p315_p7, %s602_s18), 1  ;;  %s527_s29 = sld [smem:[#allocation2 + $0x2]] }
  0x13   : > { %s519_s30 = sshll.u32 %s700_s18, 3  ;;  %s533_s6 = sshll.u32 %s700_s18, 5 }
  0x14   : > { %s321_s9 = scalar_lea.vmem %s690_s1, %s519_s30  ;;  %s350_s12 = scalar_lea.vmem %s694_s5, %s533_s6 }
  0x15   : > { %v352_v0 = vld [vmem:[%s321_s9] sm:$0xff]  ;;  %s328_s15 = scalar_lea.vmem %s691_s2, %s519_s30  ;;  %s335_s21 = scalar_lea.vmem %s692_s3, %s519_s30 }
  0x16   : > { %v353_v1 = vstv %s351_s27  ;;  %v357_v3 = vld [vmem:[%s328_s15] sm:$0xff]  ;;  %s529_s18 = sld [smem:[#allocation2 + $0x3]]  ;;  %s342_s25 = scalar_lea.vmem %s693_s4, %s519_s30 }
  0x17   : > { %v354_v2 = vmul.f32 %v353_v1, %v352_v0  ;;  %v358_v4 = vstv %s525_s28  ;;  %v363_v5 = vld [vmem:[%s335_s21] sm:$0xff] }
  0x18   : > { %v359_v6 = vmul.f32 %v358_v4, %v357_v3  ;;  %v364_v7 = vstv %s527_s29  ;;  %v369_v9 = vld [vmem:[%s342_s25] sm:$0xff] }
  0x19   : > { %355 = vst [vmem:[%s350_s12] sm:$0xff] %v354_v2  ;;  %v365_v8 = vmul.f32 %v364_v7, %v363_v5 }
  0x1a   : > { %526 = vst [vmem:[%s350_s12 + $0x8] sm:$0xff] %v359_v6 }
  0x1b   : > { %528 = vst [vmem:[%s350_s12 + $0x10] sm:$0xff] %v365_v8 }
  0x1c   : > { %v370_v10 = vstv %s529_s18 }
  0x1d   : > { %v371_v11 = vmul.f32 %v370_v10, %v369_v9 }
  0x1f   : > { %530 = vst [vmem:[%s350_s12 + $0x18] sm:$0xff] %v371_v11 }
  0x20 PF: > { %s16_s20 = sadd.s32 1, %s610_s20   ;;  %s695_s18 = smov %s606_s19 }
  0x21   : > { %p13_p8 = scmp.ge.s32.totalorder %s16_s20, 4   ;;  %s696_s19 = smov %s698_s22 }
  0x23   :  { %15 = sbr.rel (!%p13_p8) target bundleno = 2 (0x2), region = 87 }
  0x28   :  { %401 = vsyncpa [#allocation3], 1 }
  0x29   :  { %403 = vsyncpa [#allocation3 + $0x1], 1 }

</bundles_post_ra>
